<compile_context>
chip_gen: v5e
topology: v5e:2x2
jax: 0.10.0
libtpu: 0.0.40
codegen_flags: <defaults>
</compile_context>

<pallas_src>
import functools

import jax
import jax.numpy as jnp
from jax.experimental import pallas as pl
from jax.experimental.pallas import tpu as pltpu

HIDDEN = 64
LANE = 128


def _round_up(x, m):
    return ((x + m - 1) // m) * m


def _cdiv(a, b):
    return -(-a // b)


def critic_kernel(obs_ref, w1_ref, b1_ref, w2_ref, b2_ref, w3_ref, b3_ref, out_ref):
    # obs arrives as f32 (no wrapper-side astype pass); cast to bf16 for the MXU.
    x = obs_ref[...].astype(jnp.bfloat16)

    # Layer 1: Linear + ReLU (bf16 MXU matmul, f32 accumulate, f32 VPU ops).
    a1 = jnp.dot(x, w1_ref[...], preferred_element_type=jnp.float32)
    a1 = jnp.maximum(a1 + b1_ref[...], 0.0)

    # Layer 2: Linear + ReLU.
    a2 = jnp.dot(a1.astype(jnp.bfloat16), w2_ref[...],
                 preferred_element_type=jnp.float32)
    a2 = jnp.maximum(a2 + b2_ref[...], 0.0)

    # Layer 3: Linear (no activation). Output block is lane-dense (>=128 wide).
    out = jnp.dot(a2.astype(jnp.bfloat16), w3_ref[...],
                  preferred_element_type=jnp.float32)
    out_ref[...] = (out + b3_ref[...]).astype(out_ref.dtype)


def prepare_params(params):
    """One-time (outside the forward pass) padding + bf16 cast of the weights.

    Pads the hidden dim 64 -> 128 lanes and the final fan-out to a multiple of
    128, zero-filled (numerically exact), and casts matmul operands to bf16.
    """
    w1, b1 = params["w1"], params["b1"]
    w2, b2 = params["w2"], params["b2"]
    w3, b3 = params["w3"], params["b3"]
    in_dims, H = w1.shape
    out_dims = w3.shape[1]
    H_pad = _round_up(max(H, LANE), LANE)
    OUT_PAD = _round_up(max(out_dims, LANE), LANE)
    dh = H_pad - H
    do = OUT_PAD - out_dims
    return {
        "w1": jnp.pad(w1, ((0, 0), (0, dh))).astype(jnp.bfloat16),
        "b1": jnp.pad(b1, ((0, 0), (0, dh))),
        "w2": jnp.pad(w2, ((0, dh), (0, dh))).astype(jnp.bfloat16),
        "b2": jnp.pad(b2, ((0, 0), (0, dh))),
        "w3": jnp.pad(w3, ((0, dh), (0, do))).astype(jnp.bfloat16),
        "b3": jnp.pad(b3, ((0, 0), (0, do))),
    }


@functools.partial(jax.jit, static_argnames=("out_dims", "tb_max", "out_dtype"))
def critic_forward(obs, prepared, *, out_dims, tb_max=2048, out_dtype=jnp.float32):
    """Fused forward pass of CriticNetwork via one batch-tiled pallas_call.

    obs: (B, in_dims) float32
    prepared: output of prepare_params (padded, bf16 weights / f32 biases).
    out_dtype: jnp.float32 (default, matches the PyTorch module) or
               jnp.bfloat16 to halve output writeback if downstream tolerates it.
    """
    w1, b1 = prepared["w1"], prepared["b1"]
    w2, b2 = prepared["w2"], prepared["b2"]
    w3, b3 = prepared["w3"], prepared["b3"]

    B, in_dims = obs.shape
    H_pad = w1.shape[1]       # 128
    OUT_PAD = w3.shape[1]     # multiple of 128

    # Equal-split batch tiling: tiles are multiples of 16 sublanes (bf16 vreg
    # packing), padding capped at <= 15 rows, and (when B is big enough) at
    # least 2 tiles so v7x's second TensorCore gets work.
    min_tiles = 2 if B >= 32 else 1
    n_tiles = max(min_tiles, _cdiv(B, tb_max))
    TB = _round_up(_cdiv(B, n_tiles), 16)
    n_tiles = _cdiv(B, TB)
    B_pad = n_tiles * TB

    if B_pad != B:
        obs = jnp.pad(obs, ((0, B_pad - B), (0, 0)))

    out_bytes = jnp.dtype(out_dtype).itemsize
    weight_bytes = (in_dims * H_pad + H_pad * H_pad + H_pad * OUT_PAD) * 2
    bias_bytes = (2 * H_pad + OUT_PAD) * 4

    # VMEM request: double-buffered tiles + resident weights + headroom,
    # clamped well under the v7x 64 MiB physical VMEM.
    vmem = (2 * (TB * in_dims * 4 + TB * OUT_PAD * out_bytes)
            + 2 * (weight_bytes + bias_bytes)
            + (4 << 20))
    vmem = min(int(vmem), 32 * 1024 * 1024)

    flops = 2 * B_pad * (in_dims * H_pad + H_pad * H_pad + H_pad * OUT_PAD)
    bytes_accessed = (B_pad * in_dims * 4
                      + weight_bytes + bias_bytes
                      + B_pad * OUT_PAD * out_bytes)

    out_padded = pl.pallas_call(
        critic_kernel,
        out_shape=jax.ShapeDtypeStruct((B_pad, OUT_PAD), out_dtype),
        grid_spec=pltpu.PrefetchScalarGridSpec(
            num_scalar_prefetch=0,
            grid=(n_tiles,),
            in_specs=[
                # obs: tiled along the batch (the only axis worth pipelining).
                pl.BlockSpec((TB, in_dims), lambda i: (i, 0)),
                # Weights / biases: constant index_map -> VMEM-resident.
                pl.BlockSpec((in_dims, H_pad), lambda i: (0, 0)),
                pl.BlockSpec((1, H_pad), lambda i: (0, 0)),
                pl.BlockSpec((H_pad, H_pad), lambda i: (0, 0)),
                pl.BlockSpec((1, H_pad), lambda i: (0, 0)),
                pl.BlockSpec((H_pad, OUT_PAD), lambda i: (0, 0)),
                pl.BlockSpec((1, OUT_PAD), lambda i: (0, 0)),
            ],
            out_specs=pl.BlockSpec((TB, OUT_PAD), lambda i: (i, 0)),
        ),
        compiler_params=pltpu.CompilerParams(
            dimension_semantics=("parallel",),
            vmem_limit_bytes=vmem,
        ),
        cost_estimate=pl.CostEstimate(
            flops=flops, transcendentals=0, bytes_accessed=bytes_accessed
        ),
    )(obs, w1, b1, w2, b2, w3, b3)

    return out_padded[:B, :out_dims].astype(jnp.float32)


def init_params(key, in_dims, out_dims, hidden=HIDDEN):
    """Init mirroring torch.nn.Linear default (U[-1/sqrt(fan_in), 1/sqrt(fan_in)])."""
    keys = jax.random.split(key, 6)

    def linear(kw, kb, fan_in, fan_out):
        bound = 1.0 / jnp.sqrt(jnp.float32(fan_in))
        w = jax.random.uniform(kw, (fan_in, fan_out), jnp.float32, -bound, bound)
        b = jax.random.uniform(kb, (1, fan_out), jnp.float32, -bound, bound)
        return w, b

    w1, b1 = linear(keys[0], keys[1], in_dims, hidden)
    w2, b2 = linear(keys[2], keys[3], hidden, hidden)
    w3, b3 = linear(keys[4], keys[5], hidden, out_dims)
    return {"w1": w1, "b1": b1, "w2": w2, "b2": b2, "w3": w3, "b3": b3}


def critic_reference_bf16(obs, params):
    """Reference with identical numerics to the kernel (bf16 MXU inputs, f32 acc)."""
    w1 = params["w1"].astype(jnp.bfloat16)
    w2 = params["w2"].astype(jnp.bfloat16)
    w3 = params["w3"].astype(jnp.bfloat16)
    a1 = jnp.dot(obs.astype(jnp.bfloat16), w1, preferred_element_type=jnp.float32)
    a1 = jnp.maximum(a1 + params["b1"], 0.0)
    a2 = jnp.dot(a1.astype(jnp.bfloat16), w2, preferred_element_type=jnp.float32)
    a2 = jnp.maximum(a2 + params["b2"], 0.0)
    out = jnp.dot(a2.astype(jnp.bfloat16), w3, preferred_element_type=jnp.float32)
    return out + params["b3"]


def critic_reference_f32(obs, params):
    a1 = jnp.maximum(obs @ params["w1"] + params["b1"], 0.0)
    a2 = jnp.maximum(a1 @ params["w2"] + params["b2"], 0.0)
    return a2 @ params["w3"] + params["b3"]


if __name__ == "__main__":
    key = jax.random.PRNGKey(0)
    k_obs, k_params = jax.random.split(key)

    B, in_dims, out_dims = 8, 32, 4
    obs = jax.random.normal(k_obs, (B, in_dims), jnp.float32)
    params = init_params(k_params, in_dims, out_dims)
    prepared = prepare_params(params)   # one-time pad + bf16 cast

    out = critic_forward(obs, prepared, out_dims=out_dims)
    out = jax.block_until_ready(out)
    assert out.shape == (B, out_dims)

    # Exact-numerics reference (same bf16 matmul inputs, f32 accumulation;
    # zero padding of the hidden/output dims is numerically exact).
    ref_bf = critic_reference_bf16(obs, params)
    assert jnp.allclose(out, ref_bf, atol=1e-4, rtol=1e-4), "mismatch vs bf16 reference"

    # Loose sanity check against the pure-f32 math (bf16 rounding only).
    ref_f32 = critic_reference_f32(obs, params)
    assert jnp.allclose(out, ref_f32, atol=5e-2, rtol=5e-2), "mismatch vs f32 reference"

    print("KERNEL_OK")
</pallas_src>

<mosaic_0001>
module attributes {stable_mosaic.version = 11 : i64} {
  func.func @critic_kernel(%arg0: i32, %arg1: memref<16x32xf32, #tpu.memory_space<vmem>>, %arg2: memref<32x128xbf16, #tpu.memory_space<vmem>>, %arg3: memref<1x128xf32, #tpu.memory_space<vmem>>, %arg4: memref<128x128xbf16, #tpu.memory_space<vmem>>, %arg5: memref<1x128xf32, #tpu.memory_space<vmem>>, %arg6: memref<128x128xbf16, #tpu.memory_space<vmem>>, %arg7: memref<1x128xf32, #tpu.memory_space<vmem>>, %arg8: memref<16x128xf32, #tpu.memory_space<vmem>>) attributes {dimension_semantics = [#tpu.dimension_semantics<parallel>], iteration_bounds = array<i64: 1>, scalar_prefetch = 0 : i64, scratch_operands = 0 : i64, tpu.core_type = #tpu.core_type<tc>, window_params = [{transform_indices = @transform_0, window_bounds = array<i64: 16, 32>}, {pipeline_mode = #tpu.pipeline_mode<synchronous>, transform_indices = @transform_1, window_bounds = array<i64: 32, 128>}, {pipeline_mode = #tpu.pipeline_mode<synchronous>, transform_indices = @transform_2, window_bounds = array<i64: 1, 128>}, {pipeline_mode = #tpu.pipeline_mode<synchronous>, transform_indices = @transform_3, window_bounds = array<i64: 128, 128>}, {pipeline_mode = #tpu.pipeline_mode<synchronous>, transform_indices = @transform_4, window_bounds = array<i64: 1, 128>}, {pipeline_mode = #tpu.pipeline_mode<synchronous>, transform_indices = @transform_5, window_bounds = array<i64: 128, 128>}, {pipeline_mode = #tpu.pipeline_mode<synchronous>, transform_indices = @transform_6, window_bounds = array<i64: 1, 128>}, {transform_indices = @transform_7, window_bounds = array<i64: 16, 128>}]} {
    %c0 = arith.constant 0 : index
    %c0_0 = arith.constant 0 : index
    %0 = vector.load %arg1[%c0, %c0_0] : memref<16x32xf32, #tpu.memory_space<vmem>>, vector<16x32xf32>
    %1 = arith.truncf %0 : vector<16x32xf32> to vector<16x32xbf16>
    %c0_1 = arith.constant 0 : index
    %c0_2 = arith.constant 0 : index
    %2 = vector.load %arg2[%c0_1, %c0_2] : memref<32x128xbf16, #tpu.memory_space<vmem>>, vector<32x128xbf16>
    %cst = arith.constant dense<0.000000e+00> : vector<16x128xf32>
    %3 = tpu.matmul %1, %2, %cst {dimension_numbers = #tpu.dot_dimension_numbers<[1], [0], [0], [1], [0, 0, 1, 1], [], []>} : vector<16x32xbf16>, vector<32x128xbf16>, vector<16x128xf32> -> vector<16x128xf32>
    %c0_3 = arith.constant 0 : index
    %c0_4 = arith.constant 0 : index
    %4 = vector.load %arg3[%c0_3, %c0_4] : memref<1x128xf32, #tpu.memory_space<vmem>>, vector<1x128xf32>
    %5 = vector.broadcast %4 : vector<1x128xf32> to vector<16x128xf32>
    %6 = arith.addf %3, %5 : vector<16x128xf32>
    %cst_5 = arith.constant 0.000000e+00 : f32
    %7 = vector.broadcast %cst_5 : f32 to vector<16x128xf32>
    %8 = arith.maximumf %6, %7 : vector<16x128xf32>
    %9 = arith.truncf %8 : vector<16x128xf32> to vector<16x128xbf16>
    %c0_6 = arith.constant 0 : index
    %c0_7 = arith.constant 0 : index
    %10 = vector.load %arg4[%c0_6, %c0_7] : memref<128x128xbf16, #tpu.memory_space<vmem>>, vector<128x128xbf16>
    %cst_8 = arith.constant dense<0.000000e+00> : vector<16x128xf32>
    %11 = tpu.matmul %9, %10, %cst_8 {dimension_numbers = #tpu.dot_dimension_numbers<[1], [0], [0], [1], [0, 0, 1, 1], [], []>} : vector<16x128xbf16>, vector<128x128xbf16>, vector<16x128xf32> -> vector<16x128xf32>
    %c0_9 = arith.constant 0 : index
    %c0_10 = arith.constant 0 : index
    %12 = vector.load %arg5[%c0_9, %c0_10] : memref<1x128xf32, #tpu.memory_space<vmem>>, vector<1x128xf32>
    %13 = vector.broadcast %12 : vector<1x128xf32> to vector<16x128xf32>
    %14 = arith.addf %11, %13 : vector<16x128xf32>
    %cst_11 = arith.constant 0.000000e+00 : f32
    %15 = vector.broadcast %cst_11 : f32 to vector<16x128xf32>
    %16 = arith.maximumf %14, %15 : vector<16x128xf32>
    %17 = arith.truncf %16 : vector<16x128xf32> to vector<16x128xbf16>
    %c0_12 = arith.constant 0 : index
    %c0_13 = arith.constant 0 : index
    %18 = vector.load %arg6[%c0_12, %c0_13] : memref<128x128xbf16, #tpu.memory_space<vmem>>, vector<128x128xbf16>
    %cst_14 = arith.constant dense<0.000000e+00> : vector<16x128xf32>
    %19 = tpu.matmul %17, %18, %cst_14 {dimension_numbers = #tpu.dot_dimension_numbers<[1], [0], [0], [1], [0, 0, 1, 1], [], []>} : vector<16x128xbf16>, vector<128x128xbf16>, vector<16x128xf32> -> vector<16x128xf32>
    %c0_15 = arith.constant 0 : index
    %c0_16 = arith.constant 0 : index
    %20 = vector.load %arg7[%c0_15, %c0_16] : memref<1x128xf32, #tpu.memory_space<vmem>>, vector<1x128xf32>
    %21 = vector.broadcast %20 : vector<1x128xf32> to vector<16x128xf32>
    %22 = arith.addf %19, %21 : vector<16x128xf32>
    %c0_17 = arith.constant 0 : index
    %c0_18 = arith.constant 0 : index
    %23 = vector.load %arg8[%c0_17, %c0_18] : memref<16x128xf32, #tpu.memory_space<vmem>>, vector<16x128xf32>
    tpu.vector_store %arg8[%c0_17, %c0_18], %22 {strides = array<i32>} : memref<16x128xf32, #tpu.memory_space<vmem>>, vector<16x128xf32>,
    return
  }
  func.func @transform_0(%arg0: i32) -> (i32, i32) {
    %c0_i32 = arith.constant 0 : i32
    %c0_i32_0 = arith.constant 0 : i32
    return %arg0, %c0_i32 : i32, i32
  }
  func.func @transform_1(%arg0: i32) -> (i32, i32) {
    %c0_i32 = arith.constant 0 : i32
    %c0_i32_0 = arith.constant 0 : i32
    %c0_i32_1 = arith.constant 0 : i32
    return %c0_i32, %c0_i32_0 : i32, i32
  }
  func.func @transform_2(%arg0: i32) -> (i32, i32) {
    %c0_i32 = arith.constant 0 : i32
    %c0_i32_0 = arith.constant 0 : i32
    %c0_i32_1 = arith.constant 0 : i32
    return %c0_i32, %c0_i32_0 : i32, i32
  }
  func.func @transform_3(%arg0: i32) -> (i32, i32) {
    %c0_i32 = arith.constant 0 : i32
    %c0_i32_0 = arith.constant 0 : i32
    %c0_i32_1 = arith.constant 0 : i32
    return %c0_i32, %c0_i32_0 : i32, i32
  }
  func.func @transform_4(%arg0: i32) -> (i32, i32) {
    %c0_i32 = arith.constant 0 : i32
    %c0_i32_0 = arith.constant 0 : i32
    %c0_i32_1 = arith.constant 0 : i32
    return %c0_i32, %c0_i32_0 : i32, i32
  }
  func.func @transform_5(%arg0: i32) -> (i32, i32) {
    %c0_i32 = arith.constant 0 : i32
    %c0_i32_0 = arith.constant 0 : i32
    %c0_i32_1 = arith.constant 0 : i32
    return %c0_i32, %c0_i32_0 : i32, i32
  }
  func.func @transform_6(%arg0: i32) -> (i32, i32) {
    %c0_i32 = arith.constant 0 : i32
    %c0_i32_0 = arith.constant 0 : i32
    %c0_i32_1 = arith.constant 0 : i32
    return %c0_i32, %c0_i32_0 : i32, i32
  }
  func.func @transform_7(%arg0: i32) -> (i32, i32) {
    %c0_i32 = arith.constant 0 : i32
    %c0_i32_0 = arith.constant 0 : i32
    return %arg0, %c0_i32 : i32, i32
  }
}

</mosaic_0001>

<bundles_post_ra>
// kernel: critic_forward.1
= control target key start
LH: loop header
LB: loop body
LE: loop exit
PB: predicated region body
PF: predicated region fallthrough
CT: control target
= control target key end

     0   :  { %12 = vsyncpa [#allocation3], 0  ;;  %s505_s0 = inlined_call_operand.vmem [shape: f32[16,32], index: 0, kind: input, shape index: {}]   ;;  %s506_s1 = inlined_call_operand.vmem [shape: bf16[32,128], index: 1, kind: input, shape index: {}]   ;;  %s507_s2 = inlined_call_operand.vmem [shape: f32[1,128], index: 2, kind: input, shape index: {}]   ;;  %s508_s3 = inlined_call_operand.hbm [shape: bf16[128,128], index: 3, kind: input, shape index: {}]   ;;  %s509_s4 = inlined_call_operand.vmem [shape: f32[1,128], index: 4, kind: input, shape index: {}]   ;;  %s510_s5 = inlined_call_operand.hbm [shape: bf16[128,128], index: 5, kind: input, shape index: {}]   ;;  %s511_s6 = inlined_call_operand.vmem [shape: f32[1,128], index: 6, kind: input, shape index: {}]   ;;  %s512_s7 = inlined_call_operand.vmem [shape: f32[16,128], index: 7, kind: output, shape index: {}]  }
   0x1   :  { %s24_s26 = sshll.u32 %s508_s3, 4  ;;  %s25_s26 = int_to_ptr.hbm [resolvable:$true] %s24_s26 }
   0x2   :  { %13 = vsyncpa [#allocation5], 0  ;;  %s428_s27 = smov [#allocation2]   ;;  %s39_s8 = sshll.u32 %s510_s5, 4  ;;  %s40_s8 = int_to_ptr.hbm [resolvable:$true] %s39_s8 }
   0x3   :  { %s26_s28 = sshll.u32 %s428_s27, 4  ;;  %s429_s9 = smov 64   ;;  %s27_s28 = int_to_ptr.vmem [resolvable:$true] %s26_s28 }
   0x4   :  { %s430_s10 = smov 4   ;;  %s431_s11 = smov [#allocation4]  }
   0x5   :  { %32 = dma.hbm_to_vmem [thread:$0]  %s25_s26, 1024, %s27_s28, [#allocation3], %s429_s9, %s429_s9, %s430_s10  }
   0x6   :  { %s41_s12 = sshll.u32 %s431_s11, 4  ;;  %s42_s12 = int_to_ptr.vmem [resolvable:$true] %s41_s12 }
   0x7   :  { %47 = dma.hbm_to_vmem [thread:$0]  %s40_s8, 1024, %s42_s12, [#allocation5], %s429_s9, %s429_s9, %s430_s10  }
   0x8   :  { %424 = dma.done.wait [#allocation3], 1024  }
   0x9   :  { %425 = vsyncadd [#allocation3], 4294966272 }
   0xa   :  { %426 = dma.done.wait [#allocation5], 1024  }
   0xb   :  { %427 = vsyncadd [#allocation5], 4294966272  ;;  %v352_v0 = vld [vmem:[%s506_s1 + $0x8] sm:$0xff]  ;;  %v351_v1 = vld [vmem:[%s506_s1] sm:$0xff]  ;;  %vm82_vm0 = vcmask 261120  }
   0xc   :  { %v360_v2 = vld [vmem:[#allocation2 + $0x38] sm:$0xff]  ;;  %92 = vmatpush.bf16.msra.mxu0 %v352_v0  ;;  %v59_v3 = vld [vmem:[%s505_s0] sm:$0xff]  ;;  %v60_v4 = vld [vmem:[%s505_s0 + $0x8] sm:$0xff] }
   0xd   :  { %171 = vmatpush.bf16.msra.mxu1 %v360_v2  ;;  %v359_v5 = vld [vmem:[#allocation2 + $0x30] sm:$0xff]  ;;  %v61_v6 = vpack.c.bf16 %v60_v4, %v59_v3  ;;  %v358_v7 = vld [vmem:[#allocation2 + $0x28] sm:$0xff]  ;;  %v357_v8 = vld [vmem:[#allocation2 + $0x20] sm:$0xff] }
   0xe   :  { %v356_v9 = vld [vmem:[#allocation2 + $0x18] sm:$0xff]  ;;  %v355_v10 = vld [vmem:[#allocation2 + $0x10] sm:$0xff]  ;;  %v354_v11 = vld [vmem:[#allocation2 + $0x8] sm:$0xff] }
   0xf   :  { %v353_v12 = vld [vmem:[#allocation2] sm:$0xff]  ;;  %v368_v13 = vld [vmem:[#allocation4 + $0x38] sm:$0xff]  ;;  %v367_v14 = vld [vmem:[#allocation4 + $0x30] sm:$0xff] }
  0x10   :  { %93 = vmatpush.bf16.msra.mxu0 %v351_v1  ;;  %256 = vmatpush.bf16.msra.mxu2 %v368_v13  ;;  %v366_v15 = vld [vmem:[#allocation4 + $0x28] sm:$0xff]  ;;  %v365_v16 = vld [vmem:[#allocation4 + $0x20] sm:$0xff]  ;;  %v364_v25 = vld [vmem:[#allocation4 + $0x18] sm:$0xff] }
  0x11   :  { %172 = vmatpush.bf16.msra.mxu1 %v359_v5  ;;  %v373_v18 = vld [vmem:[%s507_s2] ss:$0 sm:$0xff]  ;;  %v363_v26 = vld [vmem:[#allocation4 + $0x10] sm:$0xff]  ;;  %v362_v27 = vld [vmem:[#allocation4 + $0x8] sm:$0xff] }
  0x12   :  { %v361_v28 = vld [vmem:[#allocation4] sm:$0xff] }
  0x13   :  { %286 = vmatmul.msk.bf16.vlgmr.msra.gmra.mxu0 %vm82_vm0, %v61_v6  ;;  %v374_v30 = vld [vmem:[%s509_s4] ss:$0 sm:$0xff] }
  0x14   :  { %257 = vmatpush.bf16.msra.mxu2 %v367_v14  ;;  %v375_v37 = vld [vmem:[%s511_s6] ss:$0 sm:$0xff] }
  0x15   :  { %173 = vmatpush.bf16.msra.mxu1 %v358_v7 }
  0x18   :  { %258 = vmatpush.bf16.msra.mxu2 %v366_v15 }
  0x19   :  { %174 = vmatpush.bf16.msra.mxu1 %v357_v8 }
  0x1c   :  { %259 = vmatpush.bf16.msra.mxu2 %v365_v16 }
  0x1d   :  { %175 = vmatpush.bf16.msra.mxu1 %v356_v9 }
  0x20   :  { %260 = vmatpush.bf16.msra.mxu2 %v364_v25 }
  0x21   :  { %176 = vmatpush.bf16.msra.mxu1 %v355_v10 }
  0x24   :  { %261 = vmatpush.bf16.msra.mxu2 %v363_v26 }
  0x25   :  { %177 = vmatpush.bf16.msra.mxu1 %v354_v11 }
  0x28   :  { %262 = vmatpush.bf16.msra.mxu2 %v362_v27 }
  0x29   :  { %178 = vmatpush.bf16.msra.mxu1 %v353_v12 }
  0x2c   :  { %263 = vmatpush.bf16.msra.mxu2 %v361_v28 }
  0x90   :  { %v95_v17 = vpop.f32.mrf.mxu0 }
  0x91   :  { %v96_v19 = vadd.f32 %v373_v18, %v95_v17 }
  0x93   :  { %v100_v22 = vmax.f32 %v96_v19, 0.0 }
  0x98   :  { %v97_v20 = vpop.f32.mrf.mxu0 }
  0x99   :  { %v98_v21 = vadd.f32 %v373_v18, %v97_v20 }
  0x9b   :  { %v101_v23 = vmax.f32 %v98_v21, 0.0 }
  0x9d   :  { %v102_v24 = vpack.c.bf16 %v101_v23, %v100_v22 }
  0x9f   :  { %179 = vmatmul.bf16.vlgmr.msra.gmra.mxu1 %v102_v24 }
 0x11c   :  { %v180_v29 = vpop.f32.mrf.mxu1 }
 0x11d   :  { %v181_v31 = vadd.f32 %v374_v30, %v180_v29 }
 0x11f   :  { %v185_v34 = vmax.f32 %v181_v31, 0.0 }
 0x124   :  { %v182_v32 = vpop.f32.mrf.mxu1 }
 0x125   :  { %v183_v33 = vadd.f32 %v374_v30, %v182_v32 }
 0x127   :  { %v186_v35 = vmax.f32 %v183_v33, 0.0 }
 0x129   :  { %v187_v36 = vpack.c.bf16 %v186_v35, %v185_v34 }
 0x12b   :  { %264 = vmatmul.bf16.vlgmr.msra.gmra.mxu2 %v187_v36 }
 0x1ae   :  { %v265_v38 = vpop.f32.mrf.mxu2 }
 0x1af   :  { %v266_v39 = vadd.f32 %v375_v37, %v265_v38 }
 0x1b1   :  { %270 = vst [vmem:[%s512_s7] sm:$0xff] %v266_v39 }
 0x1b6   :  { %v267_v40 = vpop.f32.mrf.mxu2 }
 0x1b7   :  { %v268_v41 = vadd.f32 %v375_v37, %v267_v40 }
 0x1b9   :  { %271 = vst [vmem:[%s512_s7 + $0x8] sm:$0xff] %v268_v41 }
 0x1ba   :  { %276 = vsyncpa [#allocation3], 1 }
 0x1bb   :  { %277 = vsyncpa [#allocation5], 1 }

</bundles_post_ra>
